<compile_context>
chip_gen: v5e
topology: v5e:2x2
jax: 0.10.0
libtpu: 0.0.40
codegen_flags: <defaults>
</compile_context>

<pallas_src>
import math

import jax
import jax.numpy as jnp
from jax import lax
from jax.experimental import pallas as pl
from jax.experimental.pallas import tpu as pltpu


def _round_up(v, m):
    return ((v + m - 1) // m) * m


def _hyp_dist_kernel(c, x1_ref, x2_ref, o_ref):
    # Upcast once in VMEM; HBM I/O stays in the caller's dtype.
    x = x1_ref[...].astype(jnp.float32)
    y = x2_ref[...].astype(jnp.float32)
    d = y - x                                   # difference vector (well conditioned)

    # Three per-row reductions (lane axis = feature dim D), sublane-major (rows, 1).
    x2s = jnp.sum(x * x, axis=-1, keepdims=True)   # ||x1||^2
    d2 = jnp.sum(d * d, axis=-1, keepdims=True)    # ||x2 - x1||^2
    xd = jnp.sum(x * d, axis=-1, keepdims=True)    # <x1, x2 - x1>

    # Pack the three (rows, 1) columns into (rows, 3) with broadcast+select and
    # transpose ONCE to a lane-dense (3, rows) view: every op below runs at full
    # 128-lane utilization instead of 1/128.
    rows = x2s.shape[0]
    lane = lax.broadcasted_iota(jnp.int32, (rows, 3), 1)
    cols = jnp.where(lane == 0, x2s, jnp.where(lane == 1, d2, xd))
    stats = jnp.transpose(cols)                 # (3, rows), lane-major
    x2s = stats[0:1, :]
    d2 = stats[1:2, :]
    xd = stats[2:3, :]

    cf = jnp.float32(c)
    sqrt_c = jnp.float32(math.sqrt(c))
    inv_sqrt_c = jnp.float32(1.0 / math.sqrt(c))

    # Derived quantities (exact identities): <x1,x2> = ||x1||^2 + <x1,d>,
    # ||x2||^2 = ||x1||^2 + 2<x1,d> + ||d||^2.
    xys = x2s + xd
    y2s = x2s + 2.0 * xd + d2

    B = 1.0 - cf * x2s
    quad = B * B - 2.0 * cf * B * xd + (cf * cf) * d2 * x2s   # >= 0 (Cauchy-Schwarz)
    num_sq = d2 * jnp.maximum(quad, jnp.float32(0.0))          # ||mobius_add numerator||^2
    denomp = 1.0 - 2.0 * cf * xys + (cf * cf) * x2s * y2s + jnp.float32(1e-5)

    # dist = 2/sqrt(c) * artanh(clip(sqrt(c)*||num||/denomp, 1-1e-5))
    #      = (log(denomp + s) - log(denomp - s)) / sqrt(c),
    #        s = min(sqrt(c)*||num||, (1-1e-5)*denomp)       (same clamp, no division)
    s = sqrt_c * jnp.sqrt(num_sq)
    s = jnp.minimum(s, jnp.float32(1.0 - 1e-5) * denomp)
    dist = (jnp.log(denomp + s) - jnp.log(denomp - s)) * inv_sqrt_c

    o_ref[...] = dist.astype(o_ref.dtype)       # lane-dense (1, rows) store


def hyperbolic_distance(x1, x2, c=1.0, *, row_tile=None, target_block_bytes=None):
    """x1, x2: [N, D] points on the Poincare ball -> [N, 1] float32 hyperbolic distances."""
    n, d = x1.shape
    assert x2.shape == (n, d), "x1 and x2 must have the same shape"

    itemsize = jnp.dtype(x1.dtype).itemsize
    lanes = _round_up(max(d, 1), 128)           # VMEM lane padding for narrow D
    padded_row_f32 = lanes * 4                  # f32 working bytes per row in VMEM

    if target_block_bytes is None:
        kind = ""
        try:
            kind = jax.devices()[0].device_kind.lower()
        except Exception:
            pass
        old_gen = any(t in kind for t in ("v2", "v3", "v4", "v5"))
        # ~2 MiB f32 working set per block on v5e-and-older (16 MiB scoped-VMEM
        # default); ~4 MiB on v6e/v7x (faster HBM -> amortize ~0.35us/step cost).
        target_block_bytes = (2 if old_gen else 4) * 1024 * 1024

    if row_tile is None:
        rt = max(128, (target_block_bytes // padded_row_f32) // 128 * 128)
    else:
        rt = max(128, _round_up(int(row_tile), 128))

    # Keep >= 2 grid steps when possible: shards the "parallel" axis across both
    # v7x TensorCores and gives DMA/compute overlap on every generation.
    if n >= 256:
        rt = min(rt, _round_up(pl.cdiv(n, 2), 128))
    if rt >= n:
        rt = n      # single block: block dims == array dims (no 8/128 constraint)
    row_tile = rt

    grid = (pl.cdiv(n, row_tile),)

    # VMEM budget: double-buffered inputs + f32 in-kernel temporaries + slack.
    in_block_vmem = row_tile * lanes * itemsize
    f32_block_vmem = row_tile * lanes * 4
    vmem_limit = int(min(56 * 1024 * 1024,
                         max(32 * 1024 * 1024,
                             4 * in_block_vmem + 6 * f32_block_vmem + (2 << 20))))
    # TODO(synk): for very wide D (a single 128-row block exceeding the VMEM
    # budget), add a second "arbitrary" grid axis over D and accumulate the three
    # partial reductions in VMEM scratch before the lane-dense epilogue.

    cost = pl.CostEstimate(
        flops=int(7 * n * d + 32 * n),
        transcendentals=int(3 * n),
        bytes_accessed=int(2 * n * d * itemsize + 4 * n),
    )

    cf = float(c)
    kernel = lambda a_ref, b_ref, o_ref: _hyp_dist_kernel(cf, a_ref, b_ref, o_ref)

    out = pl.pallas_call(
        kernel,
        out_shape=jax.ShapeDtypeStruct((1, n), jnp.float32),
        grid_spec=pltpu.PrefetchScalarGridSpec(
            num_scalar_prefetch=0,
            grid=grid,
            in_specs=[
                # TODO(synk): sweep pipeline_mode=pl.Buffered(3) on v7x if a
                # profile shows exposed DMA between steps.
                pl.BlockSpec((row_tile, d), lambda i: (i, 0)),
                pl.BlockSpec((row_tile, d), lambda i: (i, 0)),
            ],
            out_specs=pl.BlockSpec((1, row_tile), lambda i: (0, i)),
        ),
        compiler_params=pltpu.CompilerParams(
            dimension_semantics=("parallel",),
            vmem_limit_bytes=vmem_limit,
        ),
        cost_estimate=cost,
    )(x1, x2)

    # keepdim=True in the reference layer -> (N, 1); reshape of (1, N) is free.
    return out.reshape(n, 1)


def _hyp_dist_ref(x1, x2, c=1.0):
    """Pure-JAX reference mirroring hyptorch pmath.dist(x1, x2, c, keepdim=True)."""
    x1 = x1.astype(jnp.float32)
    x2 = x2.astype(jnp.float32)
    sqrt_c = math.sqrt(c)
    u, v = -x1, x2
    u2 = jnp.sum(u * u, axis=-1, keepdims=True)
    v2 = jnp.sum(v * v, axis=-1, keepdims=True)
    uv = jnp.sum(u * v, axis=-1, keepdims=True)
    num = (1.0 + 2.0 * c * uv + c * v2) * u + (1.0 - c * u2) * v
    denom = 1.0 + 2.0 * c * uv + (c ** 2) * u2 * v2
    m = num / (denom + 1e-5)
    norm = jnp.linalg.norm(m, axis=-1, keepdims=True)
    z = jnp.clip(sqrt_c * norm, -1.0 + 1e-5, 1.0 - 1e-5)
    return (jnp.log(1.0 + z) - jnp.log(1.0 - z)) * 0.5 * 2.0 / sqrt_c


if __name__ == "__main__":
    key = jax.random.PRNGKey(0)
    N, D = 128, 32          # small shapes: 128 point-pairs in a 32-dim ball
    c = 1.0                 # curvature (stored as a plain float in the module)

    k1, k2 = jax.random.split(key)
    x1 = jax.random.normal(k1, (N, D), dtype=jnp.float32)
    x2 = jax.random.normal(k2, (N, D), dtype=jnp.float32)

    # Scale each row into the Poincare ball (||x|| <= 0.5), as real inputs would be.
    def into_ball(x, max_norm=0.5):
        nrm = jnp.linalg.norm(x, axis=-1, keepdims=True)
        return x * (max_norm / jnp.maximum(nrm, max_norm))

    x1 = into_ball(x1)
    x2 = into_ball(x2)

    out = jax.block_until_ready(hyperbolic_distance(x1, x2, c=c))
    ref = _hyp_dist_ref(x1, x2, c=c)

    assert out.shape == (N, 1) and out.dtype == jnp.float32
    assert jnp.allclose(out, ref.astype(jnp.float32), atol=1e-5, rtol=1e-4)

    # Coincident points: difference-vector formulation gives exactly zero distance.
    out_same = jax.block_until_ready(hyperbolic_distance(x1, x1, c=c))
    assert jnp.allclose(out_same, jnp.zeros_like(out_same), atol=1e-6)

    print("KERNEL_OK")
</pallas_src>

<mosaic_0001>
module attributes {stable_mosaic.version = 11 : i64} {
  func.func @_lambda_(%arg0: i32, %arg1: memref<128x32xf32, #tpu.memory_space<vmem>>, %arg2: memref<128x32xf32, #tpu.memory_space<vmem>>, %arg3: memref<1x128xf32, #tpu.memory_space<vmem>>) attributes {dimension_semantics = [#tpu.dimension_semantics<parallel>], iteration_bounds = array<i64: 1>, scalar_prefetch = 0 : i64, scratch_operands = 0 : i64, tpu.core_type = #tpu.core_type<tc>, window_params = [{transform_indices = @transform_0, window_bounds = array<i64: 128, 32>}, {transform_indices = @transform_1, window_bounds = array<i64: 128, 32>}, {transform_indices = @transform_2, window_bounds = array<i64: 1, 128>}]} {
    %c0 = arith.constant 0 : index
    %c0_0 = arith.constant 0 : index
    %0 = vector.load %arg1[%c0, %c0_0] : memref<128x32xf32, #tpu.memory_space<vmem>>, vector<128x32xf32>
    %c0_1 = arith.constant 0 : index
    %c0_2 = arith.constant 0 : index
    %1 = vector.load %arg2[%c0_1, %c0_2] : memref<128x32xf32, #tpu.memory_space<vmem>>, vector<128x32xf32>
    %2 = arith.subf %1, %0 : vector<128x32xf32>
    %3 = arith.mulf %0, %0 : vector<128x32xf32>
    %cst = arith.constant dense<0.000000e+00> : vector<128xf32>
    %4 = vector.multi_reduction <add>, %3, %cst [1] : vector<128x32xf32> to vector<128xf32>
    %5 = vector.shape_cast %4 : vector<128xf32> to vector<128x1xf32>
    %6 = arith.mulf %2, %2 : vector<128x32xf32>
    %cst_3 = arith.constant dense<0.000000e+00> : vector<128xf32>
    %7 = vector.multi_reduction <add>, %6, %cst_3 [1] : vector<128x32xf32> to vector<128xf32>
    %8 = vector.shape_cast %7 : vector<128xf32> to vector<128x1xf32>
    %9 = arith.mulf %0, %2 : vector<128x32xf32>
    %cst_4 = arith.constant dense<0.000000e+00> : vector<128xf32>
    %10 = vector.multi_reduction <add>, %9, %cst_4 [1] : vector<128x32xf32> to vector<128xf32>
    %11 = vector.shape_cast %10 : vector<128xf32> to vector<128x1xf32>
    %12 = tpu.iota {dimensions = array<i32: 1>} : vector<128x3xi32>
    %c0_i32 = arith.constant 0 : i32
    %13 = vector.broadcast %c0_i32 : i32 to vector<128x3xi32>
    %14 = arith.cmpi eq, %12, %13 : vector<128x3xi32>
    %c1_i32 = arith.constant 1 : i32
    %15 = vector.broadcast %c1_i32 : i32 to vector<128x3xi32>
    %16 = arith.cmpi eq, %12, %15 : vector<128x3xi32>
    %17 = vector.shape_cast %8 : vector<128x1xf32> to vector<128x1xf32>
    %18 = vector.broadcast %17 : vector<128x1xf32> to vector<128x3xf32>
    %19 = vector.shape_cast %11 : vector<128x1xf32> to vector<128x1xf32>
    %20 = vector.broadcast %19 : vector<128x1xf32> to vector<128x3xf32>
    %21 = arith.select %16, %18, %20 : vector<128x3xi1>, vector<128x3xf32>
    %22 = vector.shape_cast %5 : vector<128x1xf32> to vector<128x1xf32>
    %23 = vector.broadcast %22 : vector<128x1xf32> to vector<128x3xf32>
    %24 = arith.select %14, %23, %21 : vector<128x3xi1>, vector<128x3xf32>
    %25 = tpu.transpose %24, [1, 0] : vector<128x3xf32> -> vector<3x128xf32>
    %26 = vector.extract_strided_slice %25 {offsets = [0, 0], sizes = [1, 128], strides = [1, 1]} : vector<3x128xf32> to vector<1x128xf32>
    %27 = vector.extract_strided_slice %25 {offsets = [1, 0], sizes = [1, 128], strides = [1, 1]} : vector<3x128xf32> to vector<1x128xf32>
    %28 = vector.extract_strided_slice %25 {offsets = [2, 0], sizes = [1, 128], strides = [1, 1]} : vector<3x128xf32> to vector<1x128xf32>
    %29 = arith.addf %26, %28 : vector<1x128xf32>
    %cst_5 = arith.constant 2.000000e+00 : f32
    %30 = vector.broadcast %cst_5 : f32 to vector<1x128xf32>
    %31 = arith.mulf %30, %28 : vector<1x128xf32>
    %32 = arith.addf %26, %31 : vector<1x128xf32>
    %33 = arith.addf %32, %27 : vector<1x128xf32>
    %cst_6 = arith.constant 1.000000e+00 : f32
    %34 = vector.broadcast %cst_6 : f32 to vector<1x128xf32>
    %35 = arith.mulf %34, %26 : vector<1x128xf32>
    %cst_7 = arith.constant 1.000000e+00 : f32
    %36 = vector.broadcast %cst_7 : f32 to vector<1x128xf32>
    %37 = arith.subf %36, %35 : vector<1x128xf32>
    %38 = arith.mulf %37, %37 : vector<1x128xf32>
    %cst_8 = arith.constant 2.000000e+00 : f32
    %cst_9 = arith.constant 1.000000e+00 : f32
    %39 = arith.mulf %cst_8, %cst_9 : f32
    %40 = vector.broadcast %39 : f32 to vector<1x128xf32>
    %41 = arith.mulf %40, %37 : vector<1x128xf32>
    %42 = arith.mulf %41, %28 : vector<1x128xf32>
    %43 = arith.subf %38, %42 : vector<1x128xf32>
    %cst_10 = arith.constant 1.000000e+00 : f32
    %cst_11 = arith.constant 1.000000e+00 : f32
    %44 = arith.mulf %cst_10, %cst_11 : f32
    %45 = vector.broadcast %44 : f32 to vector<1x128xf32>
    %46 = arith.mulf %45, %27 : vector<1x128xf32>
    %47 = arith.mulf %46, %26 : vector<1x128xf32>
    %48 = arith.addf %43, %47 : vector<1x128xf32>
    %cst_12 = arith.constant 0.000000e+00 : f32
    %49 = vector.broadcast %cst_12 : f32 to vector<1x128xf32>
    %50 = arith.maximumf %48, %49 : vector<1x128xf32>
    %51 = arith.mulf %27, %50 : vector<1x128xf32>
    %cst_13 = arith.constant 2.000000e+00 : f32
    %cst_14 = arith.constant 1.000000e+00 : f32
    %52 = arith.mulf %cst_13, %cst_14 : f32
    %53 = vector.broadcast %52 : f32 to vector<1x128xf32>
    %54 = arith.mulf %53, %29 : vector<1x128xf32>
    %cst_15 = arith.constant 1.000000e+00 : f32
    %55 = vector.broadcast %cst_15 : f32 to vector<1x128xf32>
    %56 = arith.subf %55, %54 : vector<1x128xf32>
    %cst_16 = arith.constant 1.000000e+00 : f32
    %cst_17 = arith.constant 1.000000e+00 : f32
    %57 = arith.mulf %cst_16, %cst_17 : f32
    %58 = vector.broadcast %57 : f32 to vector<1x128xf32>
    %59 = arith.mulf %58, %26 : vector<1x128xf32>
    %60 = arith.mulf %59, %33 : vector<1x128xf32>
    %61 = arith.addf %56, %60 : vector<1x128xf32>
    %cst_18 = arith.constant 9.99999974E-6 : f32
    %62 = vector.broadcast %cst_18 : f32 to vector<1x128xf32>
    %63 = arith.addf %61, %62 : vector<1x128xf32>
    %64 = math.sqrt %51 : vector<1x128xf32>
    %cst_19 = arith.constant 1.000000e+00 : f32
    %65 = vector.broadcast %cst_19 : f32 to vector<1x128xf32>
    %66 = arith.mulf %65, %64 : vector<1x128xf32>
    %cst_20 = arith.constant 0.999989986 : f32
    %67 = vector.broadcast %cst_20 : f32 to vector<1x128xf32>
    %68 = arith.mulf %67, %63 : vector<1x128xf32>
    %69 = arith.minimumf %66, %68 : vector<1x128xf32>
    %70 = arith.addf %63, %69 : vector<1x128xf32>
    %71 = math.log %70 : vector<1x128xf32>
    %72 = arith.subf %63, %69 : vector<1x128xf32>
    %73 = math.log %72 : vector<1x128xf32>
    %74 = arith.subf %71, %73 : vector<1x128xf32>
    %cst_21 = arith.constant 1.000000e+00 : f32
    %75 = vector.broadcast %cst_21 : f32 to vector<1x128xf32>
    %76 = arith.mulf %74, %75 : vector<1x128xf32>
    %c0_22 = arith.constant 0 : index
    %c0_23 = arith.constant 0 : index
    %77 = vector.load %arg3[%c0_22, %c0_23] : memref<1x128xf32, #tpu.memory_space<vmem>>, vector<1x128xf32>
    tpu.vector_store %arg3[%c0_22, %c0_23], %76 {strides = array<i32>} : memref<1x128xf32, #tpu.memory_space<vmem>>, vector<1x128xf32>,
    return
  }
  func.func @transform_0(%arg0: i32) -> (i32, i32) {
    %c0_i32 = arith.constant 0 : i32
    %c0_i32_0 = arith.constant 0 : i32
    return %arg0, %c0_i32 : i32, i32
  }
  func.func @transform_1(%arg0: i32) -> (i32, i32) {
    %c0_i32 = arith.constant 0 : i32
    %c0_i32_0 = arith.constant 0 : i32
    return %arg0, %c0_i32 : i32, i32
  }
  func.func @transform_2(%arg0: i32) -> (i32, i32) {
    %c0_i32 = arith.constant 0 : i32
    %c0_i32_0 = arith.constant 0 : i32
    return %c0_i32, %arg0 : i32, i32
  }
}

</mosaic_0001>

<bundles_post_ra>
// kernel: tpu_custom_call.1
= control target key start
LH: loop header
LB: loop body
LE: loop exit
PB: predicated region body
PF: predicated region fallthrough
CT: control target
= control target key end

     0   :  { %vm76_vm0 = vcmask 261120   ;;  %s768_s0 = inlined_call_operand.vmem [shape: f32[128,32], index: 0, kind: input, shape index: {}]   ;;  %s769_s1 = inlined_call_operand.vmem [shape: f32[128,32], index: 1, kind: input, shape index: {}]   ;;  %s770_s2 = inlined_call_operand.hbm [shape: f32[1,128], index: 2, kind: output, shape index: {}]  }
   0x1   :  { %v451_v0 = vld [vmem:[%s768_s0 + $0x20] sm:$0xff]  ;;  %v456_v1 = vld [vmem:[%s768_s0 + $0x10] sm:$0xff]  ;;  %v472_v6 = vld [vmem:[%s768_s0 + $0x28] sm:$0xff] }
   0x2   :  { %v461_v2 = vld [vmem:[%s768_s0] sm:$0xff]  ;;  %v64_v3 = vmul.f32 %v451_v0, %v451_v0  ;;  %v62_v4 = vmul.f32 %v456_v1, %v456_v1  ;;  %v477_v7 = vld [vmem:[%s768_s0 + $0x18] sm:$0xff]  ;;  %v485_v11 = vld [vmem:[%s768_s0 + $0x8] sm:$0xff]  ;;  %v65_v12 = vmul.f32 %v472_v6, %v472_v6 }
   0x3   :  { %v60_v5 = vmul.f32 %v461_v2, %v461_v2  ;;  %v63_v13 = vmul.f32 %v477_v7, %v477_v7 }
   0x4   :  { %v89_v8 = vsel %vm76_vm0, %v64_v3, 0.0  ;;  %v83_v9 = vsel %vm76_vm0, %v62_v4, 0.0 }
   0x5   :  { %v77_v10 = vsel %vm76_vm0, %v60_v5, 0.0  ;;  %90 = vadd.xlane.f32.xlu2 %v89_v8  ;;  %84 = vadd.xlane.f32.xlu1 %v83_v9 }
   0x6   :  { %78 = vadd.xlane.f32.xlu0 %v77_v10 }
   0x7   :  { %7 = vsyncpa [#allocation3], 0  ;;  %v61_v14 = vmul.f32 %v485_v11, %v485_v11  ;;  %v92_v15 = vsel %vm76_vm0, %v65_v12, 0.0  ;;  %v86_v16 = vsel %vm76_vm0, %v63_v13, 0.0  ;;  %v499_v18 = vld [vmem:[%s768_s0 + $0x40] sm:$0xff]  ;;  %v504_v19 = vld [vmem:[%s768_s0 + $0x38] sm:$0xff] }
   0x8   :  { %v509_v20 = vld [vmem:[%s768_s0 + $0x30] sm:$0xff]  ;;  %v68_v21 = vmul.f32 %v499_v18, %v499_v18  ;;  %v67_v22 = vmul.f32 %v504_v19, %v504_v19  ;;  %v523_v27 = vld [vmem:[%s768_s0 + $0x58] sm:$0xff]  ;;  %v533_v29 = vld [vmem:[%s768_s0 + $0x48] sm:$0xff]  ;;  %s390_s19 = sshll.u32 %s770_s2, 4  ;;  %s391_s19 = int_to_ptr.hbm [resolvable:$true] %s390_s19 }
   0x9   :  { %v80_v17 = vsel %vm76_vm0, %v61_v14, 0.0  ;;  %v66_v23 = vmul.f32 %v509_v20, %v509_v20  ;;  %v528_v28 = vld [vmem:[%s768_s0 + $0x50] sm:$0xff]  ;;  %v71_v30 = vmul.f32 %v523_v27, %v523_v27  ;;  %v69_v32 = vmul.f32 %v533_v29, %v533_v29  ;;  %v552_v37 = vld [vmem:[%s768_s0 + $0x68] sm:$0xff]  ;;  %v557_v38 = vld [vmem:[%s768_s0 + $0x60] sm:$0xff] }
   0xa   :  { %v101_v24 = vsel %vm76_vm0, %v68_v21, 0.0  ;;  %v98_v25 = vsel %vm76_vm0, %v67_v22, 0.0  ;;  %v70_v31 = vmul.f32 %v528_v28, %v528_v28  ;;  %v547_v36 = vld [vmem:[%s768_s0 + $0x70] sm:$0xff]  ;;  %v73_v40 = vmul.f32 %v552_v37, %v552_v37  ;;  %v29_v42 = vld [vmem:[%s769_s1 + $0x8] sm:$0xff]  ;;  %v28_v43 = vld [vmem:[%s769_s1] sm:$0xff] }
   0xb   :  { %v95_v26 = vsel %vm76_vm0, %v66_v23, 0.0  ;;  %v110_v33 = vsel %vm76_vm0, %v71_v30, 0.0  ;;  %v104_v35 = vsel %vm76_vm0, %v69_v32, 0.0  ;;  %v74_v39 = vmul.f32 %v547_v36, %v547_v36  ;;  %v30_v52 = vld [vmem:[%s769_s1 + $0x10] sm:$0xff]  ;;  %v32_v60 = vld [vmem:[%s769_s1 + $0x20] sm:$0xff]  ;;  %v31_v61 = vld [vmem:[%s769_s1 + $0x18] sm:$0xff] }
   0xc   :  { %v107_v34 = vsel %vm76_vm0, %v70_v31, 0.0  ;;  %v72_v41 = vmul.f32 %v557_v38, %v557_v38  ;;  %v116_v45 = vsel %vm76_vm0, %v73_v40, 0.0  ;;  %v45_v46 = vsub.f32 %v29_v42, %v485_v11  ;;  %v33_v9 = vld [vmem:[%s769_s1 + $0x28] sm:$0xff]  ;;  %v36_v30 = vld [vmem:[%s769_s1 + $0x40] sm:$0xff]  ;;  %v38_v40 = vld [vmem:[%s769_s1 + $0x50] sm:$0xff] }
   0xd   :  { %93 = vadd.xlane.f32.xlu2 %v92_v15  ;;  %87 = vadd.xlane.f32.xlu1 %v86_v16  ;;  %v119_v44 = vsel %vm76_vm0, %v74_v39, 0.0  ;;  %v44_v47 = vsub.f32 %v28_v43, %v461_v2  ;;  %v46_v55 = vsub.f32 %v30_v52, %v456_v1  ;;  %v47_v3 = vsub.f32 %v31_v61, %v477_v7  ;;  %v35_v16 = vld [vmem:[%s769_s1 + $0x38] sm:$0xff] }
   0xe   :  { %81 = vadd.xlane.f32.xlu0 %v80_v17  ;;  %v113_v48 = vsel %vm76_vm0, %v72_v41, 0.0  ;;  %v126_v49 = vmul.f32 %v45_v46, %v45_v46  ;;  %v190_v59 = vmul.f32 %v45_v46, %v485_v11  ;;  %v49_v12 = vsub.f32 %v33_v9, %v472_v6  ;;  %v34_v17 = vld [vmem:[%s769_s1 + $0x30] sm:$0xff]  ;;  %v37_v41 = vld [vmem:[%s769_s1 + $0x48] sm:$0xff]  ;;  %v27_v9 = vld [vmem:[%s768_s0 + $0x78] sm:$0xff]  ;;  %s432_s0 = smov [#allocation2]  }
   0xf   :  { %v189_v50 = vmul.f32 %v44_v47, %v461_v2  ;;  %v125_v51 = vmul.f32 %v44_v47, %v44_v47  ;;  %v191_v57 = vmul.f32 %v46_v55, %v456_v1  ;;  %v127_v58 = vmul.f32 %v46_v55, %v46_v55  ;;  %v41_v55 = vld [vmem:[%s769_s1 + $0x68] sm:$0xff] }
  0x10   :  { %v144_v53 = vsel %vm76_vm0, %v126_v49, 0.0  ;;  %v48_v2 = vsub.f32 %v32_v60, %v451_v0  ;;  %v208_v1 = vsel %vm76_vm0, %v190_v59, 0.0  ;;  %v192_v5 = vmul.f32 %v47_v3, %v477_v7 }
  0x11   :  { %v205_v54 = vsel %vm76_vm0, %v189_v50, 0.0  ;;  %v141_v56 = vsel %vm76_vm0, %v125_v51, 0.0  ;;  %v211_v62 = vsel %vm76_vm0, %v191_v57, 0.0  ;;  %v147_v63 = vsel %vm76_vm0, %v127_v58, 0.0 }
  0x12   :  { %v129_v4 = vmul.f32 %v48_v2, %v48_v2  ;;  %v128_v8 = vmul.f32 %v47_v3, %v47_v3  ;;  %v214_v11 = vsel %vm76_vm0, %v192_v5, 0.0  ;;  %v194_v14 = vmul.f32 %v49_v12, %v472_v6 }
  0x13   :  { %v130_v15 = vmul.f32 %v49_v12, %v49_v12  ;;  %v193_v7 = vmul.f32 %v48_v2, %v451_v0  ;;  %v51_v23 = vsub.f32 %v35_v16, %v504_v19  ;;  %v57_v59 = vsub.f32 %v41_v55, %v552_v37 }
  0x14   :  { %v153_v10 = vsel %vm76_vm0, %v129_v4, 0.0  ;;  %v150_v13 = vsel %vm76_vm0, %v128_v8, 0.0  ;;  %v220_v21 = vsel %vm76_vm0, %v194_v14, 0.0 }
  0x15   :  { %102 = vadd.xlane.f32.xlu2 %v101_v24  ;;  %99 = vadd.xlane.f32.xlu1 %v98_v25  ;;  %v156_v22 = vsel %vm76_vm0, %v130_v15, 0.0  ;;  %v50_v24 = vsub.f32 %v34_v17, %v509_v20  ;;  %v217_v6 = vsel %vm76_vm0, %v193_v7, 0.0  ;;  %v132_v0 = vmul.f32 %v51_v23, %v51_v23 }
  0x16   :  { %96 = vadd.xlane.f32.xlu0 %v95_v26 }
  0x17   :  { %v195_v25 = vmul.f32 %v50_v24, %v509_v20  ;;  %v131_v26 = vmul.f32 %v50_v24, %v50_v24  ;;  %v162_v31 = vsel %vm76_vm0, %v132_v0, 0.0  ;;  %v196_v20 = vmul.f32 %v51_v23, %v504_v19 }
  0x19   :  { %v223_v32 = vsel %vm76_vm0, %v195_v25, 0.0 }
  0x1d   :  { %111 = vadd.xlane.f32.xlu2 %v110_v33  ;;  %108 = vadd.xlane.f32.xlu1 %v107_v34  ;;  %v52_v33 = vsub.f32 %v36_v30, %v499_v18  ;;  %v159_v34 = vsel %vm76_vm0, %v131_v26, 0.0 }
  0x1e   :  { %105 = vadd.xlane.f32.xlu0 %v104_v35 }
  0x1f   :  { %v197_v35 = vmul.f32 %v52_v33, %v499_v18  ;;  %v133_v39 = vmul.f32 %v52_v33, %v52_v33  ;;  %v226_v18 = vsel %vm76_vm0, %v196_v20, 0.0 }
  0x21   :  { %v229_v42 = vsel %vm76_vm0, %v197_v35, 0.0  ;;  %v165_v43 = vsel %vm76_vm0, %v133_v39, 0.0  ;;  %v253_v35 = vlaneseq }
  0x25   :  { %120 = vadd.xlane.f32.xlu2 %v119_v44  ;;  %117 = vadd.xlane.f32.xlu1 %v116_v45  ;;  %v54_v44 = vsub.f32 %v38_v40, %v528_v28  ;;  %v53_v45 = vsub.f32 %v37_v41, %v533_v29  ;;  %v692_v40 = vand.u32 127, %v253_v35 }
  0x26   :  { %114 = vadd.xlane.f32.xlu0 %v113_v48  ;;  %v39_v48 = vld [vmem:[%s769_s1 + $0x58] sm:$0xff] }
  0x27   :  { %v135_v19 = vmul.f32 %v54_v44, %v54_v44  ;;  %v198_v46 = vmul.f32 %v53_v45, %v533_v29  ;;  %v134_v47 = vmul.f32 %v53_v45, %v53_v45  ;;  %v55_v51 = vsub.f32 %v39_v48, %v523_v27 }
  0x28   :  { %v199_v29 = vmul.f32 %v54_v44, %v528_v28  ;;  %v138_v28 = vmul.f32 %v57_v59, %v57_v59  ;;  %vm256_vm1 = vcmp.eq.s32.totalorder %v692_v40, 1  ;;  %vm255_vm2 = vcmp.eq.s32.totalorder %v692_v40, 0 }
  0x29   :  { %v171_v49 = vsel %vm76_vm0, %v135_v19, 0.0  ;;  %v232_v50 = vsel %vm76_vm0, %v198_v46, 0.0  ;;  %v168_v52 = vsel %vm76_vm0, %v134_v47, 0.0 }
  0x2a   :  { %v180_v2 = vsel %vm76_vm0, %v138_v28, 0.0 }
  0x2d   :  { %145 = vadd.xlane.f32.xlu2 %v144_v53  ;;  %206 = vadd.xlane.f32.xlu1 %v205_v54  ;;  %v200_v53 = vmul.f32 %v55_v51, %v523_v27  ;;  %v136_v54 = vmul.f32 %v55_v51, %v55_v51  ;;  %v235_v27 = vsel %vm76_vm0, %v199_v29, 0.0 }
  0x2e   :  { %142 = vadd.xlane.f32.xlu0 %v141_v56  ;;  %v40_v56 = vld [vmem:[%s769_s1 + $0x60] sm:$0xff] }
  0x2f   :  { %v238_v57 = vsel %vm76_vm0, %v200_v53, 0.0  ;;  %v174_v58 = vsel %vm76_vm0, %v136_v54, 0.0  ;;  %v56_v60 = vsub.f32 %v40_v56, %v557_v38 }
  0x31   :  { %v201_v61 = vmul.f32 %v56_v60, %v557_v38  ;;  %v202_v38 = vmul.f32 %v57_v59, %v552_v37  ;;  %v75_v37 = vmul.f32 %v27_v9, %v27_v9 }
  0x33   :  { %v241_v3 = vsel %vm76_vm0, %v201_v61, 0.0  ;;  %v244_v14 = vsel %vm76_vm0, %v202_v38, 0.0 }
  0x35   :  { %212 = vadd.xlane.f32.xlu2 %v211_v62  ;;  %148 = vadd.xlane.f32.xlu1 %v147_v63  ;;  %v137_v62 = vmul.f32 %v56_v60, %v56_v60  ;;  %v42_v63 = vld [vmem:[%s769_s1 + $0x70] sm:$0xff] }
  0x36   :  { %209 = vadd.xlane.f32.xlu0 %v208_v1  ;;  %v58_v1 = vsub.f32 %v42_v63, %v547_v36 }
  0x37   :  { %v177_v4 = vsel %vm76_vm0, %v137_v62, 0.0 }
  0x38   :  { %v203_v5 = vmul.f32 %v58_v1, %v547_v36  ;;  %v139_v8 = vmul.f32 %v58_v1, %v58_v1 }
  0x3a   :  { %v183_v12 = vsel %vm76_vm0, %v139_v8, 0.0 }
  0x3d   :  { %154 = vadd.xlane.f32.xlu2 %v153_v10  ;;  %215 = vadd.xlane.f32.xlu1 %v214_v11  ;;  %v43_v10 = vld [vmem:[%s769_s1 + $0x78] sm:$0xff]  ;;  %v247_v11 = vsel %vm76_vm0, %v203_v5, 0.0  ;;  %s388_s1 = sshll.u32 %s432_s0, 4  ;;  %s389_s1 = int_to_ptr.vmem [resolvable:$true] %s388_s1 }
  0x3e   :  { %151 = vadd.xlane.f32.xlu0 %v150_v13  ;;  %v59_v13 = vsub.f32 %v43_v10, %v27_v9 }
  0x40   :  { %v204_v36 = vmul.f32 %v59_v13, %v27_v9  ;;  %v140_v15 = vmul.f32 %v59_v13, %v59_v13 }
  0x42   :  { %v186_v23 = vsel %vm76_vm0, %v140_v15, 0.0 }
  0x45   :  { %221 = vadd.xlane.f32.xlu2 %v220_v21  ;;  %157 = vadd.xlane.f32.xlu1 %v156_v22  ;;  %v250_v21 = vsel %vm76_vm0, %v204_v36, 0.0  ;;  %v122_v22 = vsel %vm76_vm0, %v75_v37, 0.0 }
  0x46   :  { %218 = vadd.xlane.f32.xlu0 %v217_v6 }
  0x4d   :  { %163 = vadd.xlane.f32.xlu2 %v162_v31  ;;  %224 = vadd.xlane.f32.xlu1 %v223_v32 }
  0x4e   :  { %160 = vadd.xlane.f32.xlu0 %v159_v34 }
  0x55   :  { %230 = vadd.xlane.f32.xlu2 %v229_v42  ;;  %166 = vadd.xlane.f32.xlu1 %v165_v43 }
  0x56   :  { %227 = vadd.xlane.f32.xlu0 %v226_v18 }
  0x5d   :  { %172 = vadd.xlane.f32.xlu2 %v171_v49  ;;  %233 = vadd.xlane.f32.xlu1 %v232_v50 }
  0x5e   :  { %169 = vadd.xlane.f32.xlu0 %v168_v52 }
  0x65   :  { %239 = vadd.xlane.f32.xlu2 %v238_v57  ;;  %175 = vadd.xlane.f32.xlu1 %v174_v58 }
  0x66   :  { %236 = vadd.xlane.f32.xlu0 %v235_v27 }
  0x6d   :  { %181 = vadd.xlane.f32.xlu2 %v180_v2  ;;  %242 = vadd.xlane.f32.xlu1 %v241_v3 }
  0x6e   :  { %178 = vadd.xlane.f32.xlu0 %v177_v4 }
  0x75   :  { %248 = vadd.xlane.f32.xlu2 %v247_v11  ;;  %184 = vadd.xlane.f32.xlu1 %v183_v12 }
  0x76   :  { %245 = vadd.xlane.f32.xlu0 %v244_v14 }
  0x78   :  { %v91_v7 = vpop.xlane.xlu2 %90  ;;  %v85_v16 = vpop.xlane.xlu1 %84 }
  0x79   :  { %v79_v17 = vpop.xlane.xlu0 %78 }
  0x7d   :  { %251 = vadd.xlane.f32.xlu1 %v250_v21  ;;  %123 = vadd.xlane.f32.xlu2 %v122_v22 }
  0x7e   :  { %187 = vadd.xlane.f32.xlu0 %v186_v23 }
  0x80   :  { %v94_v24 = vpop.xlane.xlu2 %93  ;;  %v88_v6 = vpop.xlane.xlu1 %87 }
  0x81   :  { %v82_v0 = vpop.xlane.xlu0 %81 }
  0x88   :  { %v103_v25 = vpop.xlane.xlu2 %102  ;;  %v100_v26 = vpop.xlane.xlu1 %99 }
  0x89   :  { %v97_v30 = vpop.xlane.xlu0 %96 }
  0x90   :  { %v682_v31 = vpop.xlane.xlu1 %108  ;;  %v684_v33 = vpop.xlane.xlu2 %111 }
  0x91   :  { %v106_v32 = vpop.xlane.xlu0 %105 }
  0x98   :  { %v686_v34 = vpop.xlane.xlu1 %117  ;;  %v690_v20 = vpop.xlane.xlu2 %120 }
  0x99   :  { %v688_v39 = vpop.xlane.xlu0 %114 }
  0xa0   :  { %v207_v41 = vpop.xlane.xlu1 %206  ;;  %v146_v44 = vpop.xlane.xlu2 %145 }
  0xa1   :  { %v143_v42 = vpop.xlane.xlu0 %142 }
  0xa2   :  { %v257_v43 = vsel %vm256_vm1, %v143_v42, %v207_v41 }
  0xa3   :  { %v273_v45 = vsel %vm255_vm2, %v79_v17, %v257_v43 }
  0xa7   :  { %289 = vxpose.xlu0.b32.start [1/16] (narrow) %v273_v45, 8 }
  0xa8   :  { %v149_v46 = vpop.xlane.xlu1 %148  ;;  %v213_v48 = vpop.xlane.xlu2 %212 }
  0xa9   :  { %v210_v18 = vpop.xlane.xlu0 %209  ;;  %v259_v49 = vsel %vm256_vm1, %v149_v46, %v213_v48 }
  0xaa   :  { %v258_v19 = vsel %vm256_vm1, %v146_v44, %v210_v18  ;;  %v275_v51 = vsel %vm255_vm2, %v85_v16, %v259_v49 }
  0xab   :  { %v274_v47 = vsel %vm255_vm2, %v82_v0, %v258_v19 }
  0xaf   :  { %290 = vxpose.xlu0.b32.cont [2/16] (narrow) %v274_v47, 8 }
  0xb0   :  { %v216_v52 = vpop.xlane.xlu1 %215  ;;  %v155_v54 = vpop.xlane.xlu2 %154 }
  0xb1   :  { %v152_v50 = vpop.xlane.xlu0 %151 }
  0xb2   :  { %v260_v53 = vsel %vm256_vm1, %v152_v50, %v216_v52 }
  0xb3   :  { %v276_v29 = vsel %vm255_vm2, %v88_v6, %v260_v53 }
  0xb7   :  { %291 = vxpose.xlu0.b32.cont [3/16] (narrow) %v275_v51, 8 }
  0xb8   :  { %v158_v57 = vpop.xlane.xlu1 %157  ;;  %v222_v59 = vpop.xlane.xlu2 %221 }
  0xb9   :  { %v219_v55 = vpop.xlane.xlu0 %218  ;;  %v262_v60 = vsel %vm256_vm1, %v158_v57, %v222_v59 }
  0xba   :  { %v261_v56 = vsel %vm256_vm1, %v155_v54, %v219_v55  ;;  %v278_v28 = vsel %vm255_vm2, %v94_v24, %v262_v60 }
  0xbb   :  { %v277_v58 = vsel %vm255_vm2, %v91_v7, %v261_v56 }
  0xbf   :  { %292 = vxpose.xlu0.b32.cont [4/16] (narrow) %v276_v29, 8 }
  0xc0   :  { %v225_v61 = vpop.xlane.xlu1 %224  ;;  %v164_v63 = vpop.xlane.xlu2 %163 }
  0xc1   :  { %v161_v27 = vpop.xlane.xlu0 %160 }
  0xc2   :  { %v263_v62 = vsel %vm256_vm1, %v161_v27, %v225_v61 }
  0xc3   :  { %v279_v2 = vsel %vm255_vm2, %v97_v30, %v263_v62 }
  0xc7   :  { %293 = vxpose.xlu0.b32.cont [5/16] (narrow) %v277_v58, 8 }
  0xc8   :  { %v167_v4 = vpop.xlane.xlu1 %166  ;;  %v231_v8 = vpop.xlane.xlu2 %230 }
  0xc9   :  { %v228_v3 = vpop.xlane.xlu0 %227  ;;  %v265_v38 = vsel %vm256_vm1, %v167_v4, %v231_v8 }
  0xca   :  { %v264_v1 = vsel %vm256_vm1, %v164_v63, %v228_v3  ;;  %v281_v10 = vsel %vm255_vm2, %v103_v25, %v265_v38 }
  0xcb   :  { %v280_v5 = vsel %vm255_vm2, %v100_v26, %v264_v1 }
  0xcf   :  { %294 = vxpose.xlu0.b32.cont [6/16] (narrow) %v278_v28, 8 }
  0xd0   :  { %v234_v11 = vpop.xlane.xlu1 %233  ;;  %v173_v13 = vpop.xlane.xlu2 %172 }
  0xd1   :  { %v170_v9 = vpop.xlane.xlu0 %169 }
  0xd2   :  { %v266_v12 = vsel %vm256_vm1, %v170_v9, %v234_v11 }
  0xd3   :  { %v282_v14 = vsel %vm255_vm2, %v106_v32, %v266_v12 }
  0xd7   :  { %295 = vxpose.xlu0.b32.cont [7/16] (narrow) %v279_v2, 8 }
  0xd8   :  { %v176_v15 = vpop.xlane.xlu1 %175  ;;  %v240_v16 = vpop.xlane.xlu2 %239 }
  0xd9   :  { %v237_v36 = vpop.xlane.xlu0 %236  ;;  %v268_v17 = vsel %vm256_vm1, %v176_v15, %v240_v16 }
  0xda   :  { %v267_v37 = vsel %vm256_vm1, %v173_v13, %v237_v36  ;;  %v284_v22 = vsel %vm255_vm2, %v684_v33, %v268_v17 }
  0xdb   :  { %v283_v7 = vsel %vm255_vm2, %v682_v31, %v267_v37 }
  0xdf   :  { %296 = vxpose.xlu0.b32.cont [8/16] (narrow) %v280_v5, 8 }
  0xe0   :  { %v243_v23 = vpop.xlane.xlu1 %242  ;;  %v182_v6 = vpop.xlane.xlu2 %181 }
  0xe1   :  { %v179_v21 = vpop.xlane.xlu0 %178 }
  0xe2   :  { %v269_v24 = vsel %vm256_vm1, %v179_v21, %v243_v23 }
  0xe3   :  { %v285_v0 = vsel %vm255_vm2, %v688_v39, %v269_v24 }
  0xe7   :  { %297 = vxpose.xlu0.b32.cont [9/16] (narrow) %v281_v10, 8 }
  0xe8   :  { %v185_v30 = vpop.xlane.xlu1 %184  ;;  %v249_v32 = vpop.xlane.xlu2 %248 }
  0xe9   :  { %v246_v25 = vpop.xlane.xlu0 %245  ;;  %v271_v33 = vsel %vm256_vm1, %v185_v30, %v249_v32 }
  0xea   :  { %v270_v26 = vsel %vm256_vm1, %v182_v6, %v246_v25  ;;  %v287_v35 = vsel %vm255_vm2, %v690_v20, %v271_v33 }
  0xeb   :  { %v286_v31 = vsel %vm255_vm2, %v686_v34, %v270_v26 }
  0xef   :  { %298 = vxpose.xlu0.b32.cont [10/16] (narrow) %v282_v14, 8 }
  0xf0   :  { %v252_v39 = vpop.xlane.xlu1 %251  ;;  %v124_v43 = vpop.xlane.xlu2 %123 }
  0xf1   :  { %v188_v41 = vpop.xlane.xlu0 %187 }
  0xf2   :  { %v272_v42 = vsel %vm256_vm1, %v188_v41, %v252_v39 }
  0xf3   :  { %v288_v44 = vsel %vm255_vm2, %v124_v43, %v272_v42 }
  0xf7   :  { %299 = vxpose.xlu0.b32.cont [11/16] (narrow) %v283_v7, 8 }
  0xff   :  { %300 = vxpose.xlu0.b32.cont [12/16] (narrow) %v284_v22, 8 }
 0x107   :  { %301 = vxpose.xlu0.b32.cont [13/16] (narrow) %v285_v0, 8 }
 0x10f   :  { %302 = vxpose.xlu0.b32.cont [14/16] (narrow) %v286_v31, 8 }
 0x117   :  { %303 = vxpose.xlu0.b32.cont [15/16] (narrow) %v287_v35, 8 }
 0x11f   :  { %304 = vxpose.xlu0.b32.end [16/16] (narrow) %v288_v44, 8 }
 0x14b   :  { %v305_v34 = vpop.trf.xlu0 }
 0x14c   :  { %v338_v45 = vrot.slane %v305_v34, 7  ;;  %v333_v18 = vsub.f32 1.0, %v305_v34  ;;  %v322_v46 = vrot.slane %v305_v34, 2  ;;  %v325_v48 = vmul.f32 2.0, %v305_v34 }
 0x14d   :  { %v330_v40 = vrot.slane %v305_v34, 1 }
 0x14e   :  { %v340_v19 = vmul.f32 %v338_v45, %v305_v34  ;;  %v335_v47 = vmul.f32 2.0, %v333_v18  ;;  %v334_v49 = vmul.f32 %v333_v18, %v333_v18  ;;  %v327_v52 = vrot.slane %v325_v48, 2 }
 0x14f   :  { %v324_v56 = vadd.f32 %v322_v46, %v305_v34 }
 0x150   :  { %v336_v20 = vmul.f32 %v335_v47, %v322_v46  ;;  %v342_v50 = vrot.slane %v340_v19, 1  ;;  %v329_v29 = vadd.f32 %v327_v52, %v305_v34 }
 0x151   :  { %v350_v59 = vmul.f32 2.0, %v324_v56 }
 0x152   :  { %v337_v51 = vsub.f32 %v334_v49, %v336_v20  ;;  %v332_v58 = vadd.f32 %v330_v40, %v329_v29 }
 0x153   :  { %v351_v27 = vsub.f32 1.0, %v350_v59 }
 0x154   :  { %v344_v53 = vadd.f32 %v342_v50, %v337_v51  ;;  %v352_v60 = vmul.f32 %v332_v58, %v305_v34 }
 0x156   :  { %v345_v54 = vmax.f32 %v344_v53, 0.0  ;;  %v353_v61 = vadd.f32 %v352_v60, %v351_v27 }
 0x158   :  { %v347_v55 = vrot.slane %v345_v54, 7  ;;  %v354_v2 = vadd.f32 1e-05, %v353_v61 }
 0x15a   :  { %v349_v57 = vmul.f32 %v347_v55, %v305_v34  ;;  %v367_v5 = vmul.f32 0.99999, %v354_v2 }
 0x15c   :  { %400 = vrsqrt.f32 %v349_v57  ;;  %vm362_vm3 = vcmp.eq.f32.partialorder %v349_v57, inf  ;;  %v365_v38 = vand.u32 2147483648, %v349_v57  ;;  %vm364_vm4 = vcmp.eq.f32.partialorder %v349_v57, 0.0 }
 0x15d   :  { %v369_v10 = vrot.slane %v367_v5, 7 }
 0x162   :  { %v401_v28 = vpop.eup %400 }
 0x163   :  { %v356_v62 = vmul.f32 %v401_v28, %v349_v57 }
 0x165   :  { %v357_v63 = vmul.f32 %v401_v28, %v356_v62 }
 0x167   :  { %v358_v3 = vmul.f32 0.5, %v357_v63 }
 0x169   :  { %v359_v1 = vsub.f32 1.5, %v358_v3 }
 0x16b   :  { %v360_v4 = vmul.f32 %v401_v28, %v359_v1 }
 0x16d   :  { %v361_v8 = vmul.f32 %v360_v4, %v349_v57 }
 0x16f   :  { %v363_v9 = vsel %vm362_vm3, %v349_v57, %v361_v8 }
 0x170   :  { %v366_v11 = vsel %vm364_vm4, %v365_v38, %v363_v9 }
 0x171   :  { %v371_v12 = vmin.f32 %v366_v11, %v369_v10 }
 0x173   :  { %v373_v13 = vrot.slane %v371_v12, 1 }
 0x175   :  { %v375_v14 = vadd.f32 %v373_v13, %v354_v2  ;;  %v378_v36 = vsub.f32 %v354_v2, %v373_v13 }
 0x177   :  { %402 = vlog2.f32 %v375_v14 }
 0x178   :  { %404 = vlog2.f32 %v378_v36 }
 0x17d   :  { %v403_v37 = vpop.eup %402 }
 0x17e   :  { %v405_v15 = vpop.eup %404  ;;  %v377_v7 = vmul.f32 0.6931472, %v403_v37 }
 0x17f   :  { %v380_v16 = vmul.f32 0.6931472, %v405_v15 }
 0x181   :  { %v381_v17 = vsub.f32 %v377_v7, %v380_v16 }
 0x183   :  { %382 = vst [vmem:[#allocation2] sm:$0x1] %v381_v17 }
 0x184   :  { %393 = dma.vmem_to_hbm [thread:$0]  %s389_s1, 16, %s391_s19, [#allocation3]  }
 0x185   :  { %430 = dma.done.wait [#allocation3], 16  }
 0x186   :  { %431 = vsyncadd [#allocation3], 4294967280 }
 0x187   :  { %398 = vsyncpa [#allocation3], 1 }

</bundles_post_ra>
